<compile_context>
chip_gen: v7x
topology: tpu7x:2x2x1
jax: 0.10.0
libtpu: 0.0.40
codegen_flags: <defaults>
</compile_context>

<pallas_src>
import jax
import jax.numpy as jnp
from jax.experimental import pallas as pl
from jax.experimental.pallas import tpu as pltpu


def linear_clamp_kernel(x_ref, w_ref, b_ref, o_ref):
    # MXU matmul with f32 accumulate, then bias + clamp_min(0)/clamp_max(255)
    # on the VPU, finally cast to the output dtype.
    y = jnp.dot(x_ref[...], w_ref[...], preferred_element_type=jnp.float32)
    y = y + b_ref[...]
    y = jnp.maximum(y, 0.0)      # clamp_min(0)
    y = jnp.minimum(y, 255.0)    # clamp_max(255)
    o_ref[...] = y.astype(o_ref.dtype)


def linear_clamp(x, w, b, *, block_b=2048):
    """y = clip(x @ w + b, 0, 255) with x:(B,IN), w:(IN,OUT), b:(OUT,)."""
    B, IN = x.shape
    OUT = w.shape[1]
    b2 = b.reshape(1, OUT)

    itemsize = jnp.dtype(x.dtype).itemsize
    cost = pl.CostEstimate(
        flops=2 * B * IN * OUT,
        transcendentals=0,
        bytes_accessed=(x.size + w.size + b2.size + B * OUT) * itemsize,
    )
    out_shape = jax.ShapeDtypeStruct((B, OUT), x.dtype)

    if B <= block_b:
        # Small-batch path (covers the spec's B=1): single launch, full-array
        # blocks, no padding, no grid, no post-slice.
        return pl.pallas_call(
            linear_clamp_kernel,
            out_shape=out_shape,
            cost_estimate=cost,
        )(x, w, b2)

    # General-B path: tile only the batch axis; IN/OUT stay full-extent
    # (last dim == array dim is exempt from the (8,128) divisibility rule).
    tm = block_b
    grid = (pl.cdiv(B, tm),)   # ragged trailing block is masked by Pallas
    return pl.pallas_call(
        linear_clamp_kernel,
        out_shape=out_shape,
        grid=grid,
        in_specs=[
            pl.BlockSpec((tm, IN), lambda i: (i, 0)),    # x tile over B
            pl.BlockSpec((IN, OUT), lambda i: (0, 0)),   # full W each step
            pl.BlockSpec((1, OUT), lambda i: (0, 0)),    # bias row
        ],
        out_specs=pl.BlockSpec((tm, OUT), lambda i: (i, 0)),
        compiler_params=pltpu.CompilerParams(
            dimension_semantics=("parallel",),  # grid > 1 here -> both TCs on v7x
        ),
        cost_estimate=cost,
    )(x, w, b2)


if __name__ == "__main__":
    key = jax.random.PRNGKey(0)
    kx, kw, kb = jax.random.split(key, 3)

    B, IN, OUT = 1, 16, 32
    # Input matching x1 = torch.randn(1, 16)
    x = jax.random.normal(kx, (B, IN), dtype=jnp.float32)

    # Deterministic params mimicking nn.Linear default init
    # (uniform in [-1/sqrt(IN), 1/sqrt(IN)]); stored as (IN, OUT) = W_torch.T.
    bound = 1.0 / jnp.sqrt(jnp.float32(IN))
    w = jax.random.uniform(kw, (IN, OUT), dtype=jnp.float32,
                           minval=-bound, maxval=bound)
    b = jax.random.uniform(kb, (OUT,), dtype=jnp.float32,
                           minval=-bound, maxval=bound)

    out = linear_clamp(x, w, b)
    jax.block_until_ready(out)

    # Reference check in plain JAX.
    ref = jnp.clip(x @ w + b, 0.0, 255.0)
    assert out.shape == (B, OUT)
    assert jnp.allclose(out, ref, atol=1e-5, rtol=1e-5)

    print("KERNEL_OK")
</pallas_src>

<mosaic_0001>
module attributes {stable_mosaic.version = 11 : i64} {
  func.func @linear_clamp_kernel(%arg0: memref<1x16xf32, #tpu.memory_space<vmem>>, %arg1: memref<16x32xf32, #tpu.memory_space<vmem>>, %arg2: memref<1x32xf32, #tpu.memory_space<vmem>>, %arg3: memref<1x32xf32, #tpu.memory_space<vmem>>) attributes {dimension_semantics = [], scalar_prefetch = 0 : i64, scratch_operands = 0 : i64, tpu.core_type = #tpu.core_type<tc>} {
    %c0 = arith.constant 0 : index
    %c0_0 = arith.constant 0 : index
    %0 = vector.load %arg0[%c0, %c0_0] : memref<1x16xf32, #tpu.memory_space<vmem>>, vector<1x16xf32>
    %c0_1 = arith.constant 0 : index
    %c0_2 = arith.constant 0 : index
    %1 = vector.load %arg1[%c0_1, %c0_2] : memref<16x32xf32, #tpu.memory_space<vmem>>, vector<16x32xf32>
    %cst = arith.constant dense<0.000000e+00> : vector<1x32xf32>
    %2 = tpu.matmul %0, %1, %cst {dimension_numbers = #tpu.dot_dimension_numbers<[1], [0], [0], [1], [0, 0, 1, 1], [], []>} : vector<1x16xf32>, vector<16x32xf32>, vector<1x32xf32> -> vector<1x32xf32>
    %c0_3 = arith.constant 0 : index
    %c0_4 = arith.constant 0 : index
    %3 = vector.load %arg2[%c0_3, %c0_4] : memref<1x32xf32, #tpu.memory_space<vmem>>, vector<1x32xf32>
    %4 = arith.addf %2, %3 : vector<1x32xf32>
    %cst_5 = arith.constant 0.000000e+00 : f32
    %5 = vector.broadcast %cst_5 : f32 to vector<1x32xf32>
    %6 = arith.maximumf %4, %5 : vector<1x32xf32>
    %cst_6 = arith.constant 2.550000e+02 : f32
    %7 = vector.broadcast %cst_6 : f32 to vector<1x32xf32>
    %8 = arith.minimumf %6, %7 : vector<1x32xf32>
    %c0_7 = arith.constant 0 : index
    %c0_8 = arith.constant 0 : index
    %9 = vector.load %arg3[%c0_7, %c0_8] : memref<1x32xf32, #tpu.memory_space<vmem>>, vector<1x32xf32>
    tpu.vector_store %arg3[%c0_7, %c0_8], %8 {strides = array<i32>} : memref<1x32xf32, #tpu.memory_space<vmem>>, vector<1x32xf32>,
    return
  }
}

</mosaic_0001>

<bundles_post_ra>
// kernel: tpu_custom_call.1
= control target key start
LH: loop header
LB: loop body
LE: loop exit
PB: predicated region body
PF: predicated region fallthrough
CT: control target
= control target key end

     0   :  { %8 = vsyncpa [#allocation3], 0  ;;  %s307_s0 = inlined_call_operand.hbm [shape: f32[1,16], index: 0, kind: input, shape index: {}]   ;;  %s308_s1 = inlined_call_operand.hbm [shape: f32[16,32], index: 1, kind: input, shape index: {}]   ;;  %s309_s2 = inlined_call_operand.vmem [shape: f32[1,32], index: 2, kind: input, shape index: {}]   ;;  %s310_s3 = inlined_call_operand.hbm [shape: f32[1,32], index: 3, kind: output, shape index: {}]  }
   0x1   :  { %9 = vsyncpa [#allocation6], 0 }
   0x2   :  { %10 = vsyncpa [#allocation4], 0  ;;  %s233_s12 = smov [#allocation2]   ;;  %s234_s14 = smov [#allocation5]  }
   0x3   :  { %s17_s13 = sshll.u32 %s233_s12, 4  ;;  %s26_s15 = sshll.u32 %s234_s14, 4  ;;  %s18_s13 = int_to_ptr.vmem [resolvable:$true] %s17_s13  ;;  %s261_s15 = int_to_ptr.vmem [resolvable:$true] %s26_s15 }
   0x4   :  { %s161_s18 = scalar_lea.hbm %s307_s0, 16 }
   0x5   :  { %p162_p0 = scmp.ne.s32.totalorder %s307_s0, %s161_s18  ;;  %p165_p1 = scmp.lt.u32.totalorder %s161_s18, %s307_s0 }
   0x7   :  { %p167_p2 = pnand %p165_p1, %p162_p0 }
   0x9   :  { %170 = shalt.err (!%p167_p2)
}
   0xa   :  { %s171_s23 = scalar_lea.vmem %s18_s13, 16  ;;  %s175_s24 = scalar_lea.vmem %s18_s13, 32 }
   0xb   :  { %p172_p3 = scmp.ne.s32.totalorder %s18_s13, %s171_s23  ;;  %p176_p4 = scmp.lt.s32.totalorder %s18_s13, %s18_s13 }
   0xc   :  { %p177_p5 = scmp.lt.s32.totalorder %s175_s24, %s171_s23 }
   0xe   :  { %p178_p6 = por %p177_p5, %p176_p4 }
  0x10   :  { %p179_p7 = pnand %p178_p6, %p172_p3 }
  0x12   :  { %182 = shalt.err (!%p179_p7)
}
  0x13   :  { %20 = dma.hbm_to_vmem [thread:$0]  %s307_s0, 16, %s18_s13, [#allocation3]  }
  0x14   :  { %s183_s29 = scalar_lea.hbm %s308_s1, 256 }
  0x15   :  { %p184_p8 = scmp.ne.s32.totalorder %s308_s1, %s183_s29  ;;  %p187_p9 = scmp.lt.u32.totalorder %s183_s29, %s308_s1 }
  0x17   :  { %p189_p10 = pnand %p187_p9, %p184_p8 }
  0x19   :  { %192 = shalt.err (!%p189_p10)
}
  0x1a   :  { %s193_s7 = scalar_lea.vmem %s261_s15, 256  ;;  %p198_p12 = scmp.lt.s32.totalorder %s261_s15, %s261_s15 }
  0x1b   :  { %p194_p11 = scmp.ne.s32.totalorder %s261_s15, %s193_s7  ;;  %p199_p13 = scmp.lt.s32.totalorder %s193_s7, %s193_s7 }
  0x1d   :  { %p200_p0 = por %p199_p13, %p198_p12 }
  0x1f   :  { %p201_p1 = pnand %p200_p0, %p194_p11 }
  0x21   :  { %204 = shalt.err (!%p201_p1)
}
  0x22   :  { %s235_s0 = smov 128   ;;  %s236_s8 = smov 8  }
  0x23   :  { %32 = dma.hbm_to_vmem [thread:$0]  %s308_s1, 256, %s261_s15, [#allocation6], %s235_s0, %s235_s0, %s236_s8  }
  0x24   :  { %227 = dma.done.wait [#allocation3], 16  }
  0x25   :  { %228 = vsyncadd [#allocation3], 4294967280 }
  0x26   :  { %229 = dma.done.wait [#allocation6], 256  }
  0x27   :  { %230 = vsyncadd [#allocation6], 4294967040  ;;  %v237_v0 = vmov 0.0|0.0   ;;  %vm238_vm0 = vmmov 0   ;;  %v239_v1 = vmov 0.0   ;;  %v42_v2 = vld [vmem:[#allocation5] sm:$0xff] }
  0x28   :  { %150 = vmatprep.subr.bf16.mxu0 %v237_v0  ;;  %147 = vmatprep.mubr.msk.f32.mxu0 %vm238_vm0, %v239_v1  ;;  %v43_v3 = vld [vmem:[#allocation5 + $0x8] sm:$0xff]  ;;  %v41_v5 = vld [vmem:[#allocation2] sm:$0x1]  ;;  %vm45_vm1 = vcmask 130048   ;;  %s240_s1 = smov [#allocation7]   ;;  %vm121_vm2 = vcmask 253952  }
  0x29   :  { %v151_v4 = vpack.c.bf16 %v43_v3, %v42_v2  ;;  %v44_v6 = vld [vmem:[%s309_s2] sm:$0x1]  ;;  %s129_s13 = sshll.u32 %s240_s1, 4  ;;  %s130_s13 = int_to_ptr.vmem [resolvable:$true] %s129_s13 }
  0x2a   :  { %s205_s14 = scalar_lea.vmem %s130_s13, 16  ;;  %s209_s15 = scalar_lea.vmem %s130_s13, 32 }
  0x2b   :  { %152 = vmatpush3.bf16.msra.mxu0 %v151_v4  ;;  %p206_p2 = scmp.ne.s32.totalorder %s130_s13, %s205_s14  ;;  %p210_p3 = scmp.lt.s32.totalorder %s130_s13, %s130_s13 }
  0x2c   :  { %p211_p4 = scmp.lt.s32.totalorder %s209_s15, %s205_s14 }
  0x2e   :  { %148 = vmatmul.mubr.msk.f32.vlgmr.msra.gmra.mrb[0].mxu0 %vm45_vm1, %v41_v5  ;;  %p212_p5 = por %p211_p4, %p210_p3 }
  0x30   :  { %p213_p6 = pnand %p212_p5, %p206_p2 }
 0x101   :  { %v115_v7 = vpop.f32.mrb[0].mxu0 }
 0x102   :  { %v116_v8 = vadd.f32 %v115_v7, %v44_v6  ;;  %v149_v9 = vpop.f32.mrb[1].mxu0 }
 0x104   :  { %v119_v10 = vmax.f32 %v116_v8, 0.0 }
 0x106   :  { %v120_v11 = vmin.f32 %v119_v10, 255.0 }
 0x108   :  { %122 = vst.msk [vmem:[#allocation7] sm:$0x1] %vm121_vm2, %v120_v11 }
 0x109   :  { %216 = shalt.err (!%p213_p6)
}
 0x10a   :  { %s217_s17 = scalar_lea.hbm %s310_s3, 16 }
 0x10b   :  { %p218_p7 = scmp.ne.s32.totalorder %s310_s3, %s217_s17  ;;  %p221_p8 = scmp.lt.u32.totalorder %s217_s17, %s310_s3 }
 0x10d   :  { %p223_p9 = pnand %p221_p8, %p218_p7 }
 0x10f   :  { %226 = shalt.err (!%p223_p9)
}
 0x110   :  { %132 = dma.vmem_to_hbm [thread:$0]  %s130_s13, 16, %s310_s3, [#allocation4]  }
 0x111   :  { %231 = dma.done.wait [#allocation4], 16  }
 0x112   :  { %232 = vsyncadd [#allocation4], 4294967280 }
 0x113   :  { %136 = vsyncpa [#allocation3], 1 }
 0x114   :  { %137 = vsyncpa [#allocation6], 1 }
 0x115   :  { %138 = vsyncpa [#allocation4], 1 }

</bundles_post_ra>
